<compile_context>
chip_gen: v7x
topology: tpu7x:2x2x1
jax: 0.10.0
libtpu: 0.0.40
codegen_flags: <defaults>
</compile_context>

<pallas_src>
import functools

import jax
import jax.numpy as jnp
from jax.experimental import pallas as pl
from jax.experimental.pallas import tpu as pltpu

EPS = 1e-5


def _round_up(x: int, m: int) -> int:
    return (x + m - 1) // m * m


def _global_scale(weight, eps):
    # Global scale over the FULL, unpadded table; fused abs+mean reduction
    # (one HBM read of the table, no materialised f32 copy).
    return jnp.mean(jnp.abs(weight).astype(jnp.float32)) + eps


# --------------------------------------------------------------------------- #
# Fused gather + ternary-quantize kernel.
#   ids_ref   : (tokens_pad,) int32 in SMEM (scalar-prefetched; drives the row DMAs)
#   scale_ref : (1,) f32 in SMEM (global scale = mean(|W|) + eps)
#   w_hbm     : (vocab, hidden) weight table, left in HBM (memory_space=ANY)
#   o_ref     : (token_tile, hidden) output block in VMEM
#   row_buf   : (token_tile, hidden) VMEM scratch the gathered rows land in
#   copy_sem  : (1,) DMA semaphore shared by all row copies of this step
# --------------------------------------------------------------------------- #
def _gather_quantize_kernel(ids_ref, scale_ref, w_hbm, o_ref, row_buf, copy_sem,
                            *, token_tile):
    base = pl.program_id(0) * token_tile

    # Issue one row-gather DMA per token; all token_tile copies are in flight at once
    # (latency hiding), all signalling the same completion semaphore.
    @pl.loop(0, token_tile)
    def _issue(g):
        row = ids_ref[base + g]
        pltpu.make_async_copy(
            w_hbm.at[pl.ds(row, 1)], row_buf.at[pl.ds(g, 1)], copy_sem.at[0]
        ).start()

    # Drain: one wait per (identically sized) copy.  row_buf is only read after ALL
    # waits have retired, so tallying them on the shared semaphore is sufficient.
    @pl.loop(0, token_tile)
    def _drain(g):
        pltpu.make_async_copy(
            w_hbm.at[pl.ds(0, 1)], row_buf.at[pl.ds(g, 1)], copy_sem.at[0]
        ).wait()

    # Ternary quantization on the gathered tile (pure VPU work, overlapped with the
    # pipelined output writeback of the neighbouring grid steps).
    scale = scale_ref[0]
    wq = jnp.clip(jnp.round(row_buf[...].astype(jnp.float32) / scale), -1.0, 1.0)
    o_ref[...] = wq.astype(o_ref.dtype)


def bit_embedding(ids, weight, *, eps=EPS, token_tile=128, out_dtype=None):
    """BitEmbedding forward: out[t] = clamp(round(W[ids[t]] / (mean|W| + eps)), -1, 1)."""
    vocab, hidden = weight.shape
    # Default keeps F.embedding semantics (output dtype == weight dtype).  Ternary values
    # are exact in bf16, so callers may pass out_dtype=jnp.bfloat16 to halve writeback.
    out_dtype = jnp.dtype(out_dtype) if out_dtype is not None else jnp.dtype(weight.dtype)

    scale_arr = jnp.reshape(_global_scale(weight, eps), (1,)).astype(jnp.float32)

    ids_flat = ids.reshape(-1).astype(jnp.int32)
    tokens = int(ids_flat.shape[0])
    # Output-block sublane dim must be a multiple of 8; clamp the tile to the problem size.
    tt = min(_round_up(token_tile, 8), _round_up(tokens, 8))
    tokens_pad = _round_up(tokens, tt)
    ids_pad = jnp.pad(ids_flat, (0, tokens_pad - tokens))   # padded ids hit row 0, sliced off

    out_block_bytes = tt * hidden * out_dtype.itemsize
    row_buf_bytes = tt * hidden * weight.dtype.itemsize
    # Double-buffered output block + gather scratch + slack; capped <= 48 MiB (v7x-safe).
    vmem_bytes = int(min(48 << 20,
                         max(8 << 20, 2 * out_block_bytes + row_buf_bytes + (2 << 20))))

    out2d = pl.pallas_call(
        functools.partial(_gather_quantize_kernel, token_tile=tt),
        out_shape=jax.ShapeDtypeStruct((tokens_pad, hidden), out_dtype),
        grid_spec=pltpu.PrefetchScalarGridSpec(
            num_scalar_prefetch=1,                                   # ids -> SMEM
            grid=(tokens_pad // tt,),
            in_specs=[
                pl.BlockSpec(memory_space=pltpu.MemorySpace.SMEM),   # global scale (1,)
                pl.BlockSpec(memory_space=pl.ANY),                   # weight table stays in HBM
            ],
            out_specs=pl.BlockSpec((tt, hidden), lambda i, ids: (i, 0)),
            scratch_shapes=[
                pltpu.VMEM((tt, hidden), weight.dtype),              # gathered raw rows
                pltpu.SemaphoreType.DMA((1,)),                       # shared completion counter
            ],
        ),
        compiler_params=pltpu.CompilerParams(
            dimension_semantics=("parallel",),   # independent steps -> megacore-friendly
            vmem_limit_bytes=vmem_bytes,
        ),
        cost_estimate=pl.CostEstimate(
            flops=3 * tokens_pad * hidden,
            transcendentals=0,
            bytes_accessed=tokens_pad * hidden
            * (weight.dtype.itemsize + out_dtype.itemsize) + tokens_pad * 4,
        ),
    )(ids_pad, scale_arr, weight)

    return out2d[:tokens].reshape(*ids.shape, hidden)


# --------------------------------------------------------------------------- #
# Pure-JAX reference mirroring the PyTorch module.
# --------------------------------------------------------------------------- #
def bit_embedding_reference(ids, weight, eps=EPS):
    scale = _global_scale(weight, eps)
    wq = jnp.clip(jnp.round(weight.astype(jnp.float32) / scale), -1.0, 1.0)
    return jnp.take(wq, ids, axis=0).astype(weight.dtype)


if __name__ == "__main__":
    batch, seq, vocab, hidden = 2, 8, 512, 128

    key = jax.random.PRNGKey(0)
    k_ids, k_w = jax.random.split(key)
    ids = jax.random.randint(k_ids, (batch, seq), 0, vocab, dtype=jnp.int32)
    weight = jax.random.normal(k_w, (vocab, hidden), dtype=jnp.float32)

    out = bit_embedding(ids, weight)
    jax.block_until_ready(out)

    ref = bit_embedding_reference(ids, weight)
    assert out.shape == (batch, seq, hidden), out.shape
    assert out.dtype == weight.dtype, out.dtype
    assert jnp.array_equal(out, ref), float(jnp.max(jnp.abs(out - ref)))

    print("KERNEL_OK")
</pallas_src>

<mosaic_0001>
module attributes {stable_mosaic.version = 11 : i64} {
  func.func @_gather_quantize_kernel(%arg0: i32, %arg1: memref<16xi32, #tpu.memory_space<smem>>, %arg2: memref<1xf32, #tpu.memory_space<smem>>, %arg3: memref<512x128xf32, #tpu.memory_space<any>>, %arg4: memref<16x128xf32, #tpu.memory_space<vmem>>, %arg5: memref<16x128xf32, #tpu.memory_space<vmem>>, %arg6: memref<1x!tpu.dma_semaphore, #tpu.memory_space<semaphore_mem>>) attributes {dimension_semantics = [#tpu.dimension_semantics<parallel>], iteration_bounds = array<i64: 1>, scalar_prefetch = 1 : i64, scratch_operands = 2 : i64, tpu.core_type = #tpu.core_type<tc>, window_params = [{transform_indices = @transform_0, window_bounds = array<i64: 1>}, {}, {transform_indices = @transform_2, window_bounds = array<i64: 16, 128>}]} {
    %c16_i32 = arith.constant 16 : i32
    %0 = arith.muli %arg0, %c16_i32 : i32
    %c0_i32 = arith.constant 0 : i32
    %c16_i32_0 = arith.constant 16 : i32
    %1 = arith.addi %c0_i32, %c16_i32_0 : i32
    %c1_i32 = arith.constant 1 : i32
    scf.for %arg7 = %c0_i32 to %1 step %c1_i32  : i32 {
      %c1_i32_11 = arith.constant 1 : i32
      %13 = arith.muli %arg7, %c1_i32_11 : i32
      %c0_i32_12 = arith.constant 0 : i32
      %14 = arith.addi %c0_i32_12, %13 : i32
      %15 = arith.addi %0, %14 : i32
      %16 = arith.index_cast %15 : i32 to index
      %17 = memref.load %arg1[%16] : memref<16xi32, #tpu.memory_space<smem>>
      %c0_i32_13 = arith.constant 0 : i32
      %c0_i32_14 = arith.constant 0 : i32
      %18 = tpu.memref_slice %arg3[%17, %c0_i32_14] : memref<512x128xf32, #tpu.memory_space<any>> -> memref<1x128xf32, #tpu.memory_space<any>>
      %c0_i32_15 = arith.constant 0 : i32
      %19 = tpu.memref_slice %arg5[%14, %c0_i32_15] : memref<16x128xf32, #tpu.memory_space<vmem>> -> memref<1x128xf32, #tpu.memory_space<vmem>>
      %20 = tpu.memref_slice %arg6[%c0_i32_13] : memref<1x!tpu.dma_semaphore, #tpu.memory_space<semaphore_mem>> -> memref<1x!tpu.dma_semaphore, #tpu.memory_space<semaphore_mem>>
      %21 = tpu.memref_squeeze %20 : memref<1x!tpu.dma_semaphore, #tpu.memory_space<semaphore_mem>> -> memref<!tpu.dma_semaphore, #tpu.memory_space<semaphore_mem>>
      tpu.enqueue_dma source(%18 : memref<1x128xf32, #tpu.memory_space<any>>) target(%19 : memref<1x128xf32, #tpu.memory_space<vmem>>) target_semaphore(%21 : memref<!tpu.dma_semaphore, #tpu.memory_space<semaphore_mem>>)
    }
    %c16_i32_1 = arith.constant 16 : i32
    %c0_i32_2 = arith.constant 0 : i32
    %c16_i32_3 = arith.constant 16 : i32
    %2 = arith.addi %c0_i32_2, %c16_i32_3 : i32
    %c1_i32_4 = arith.constant 1 : i32
    scf.for %arg7 = %c0_i32_2 to %2 step %c1_i32_4  : i32 {
      %c1_i32_11 = arith.constant 1 : i32
      %13 = arith.muli %arg7, %c1_i32_11 : i32
      %c0_i32_12 = arith.constant 0 : i32
      %14 = arith.addi %c0_i32_12, %13 : i32
      %c0_i32_13 = arith.constant 0 : i32
      %c0_i32_14 = arith.constant 0 : i32
      %c0_i32_15 = arith.constant 0 : i32
      %15 = tpu.memref_slice %arg3[%c0_i32_14, %c0_i32_15] : memref<512x128xf32, #tpu.memory_space<any>> -> memref<1x128xf32, #tpu.memory_space<any>>
      %c0_i32_16 = arith.constant 0 : i32
      %16 = tpu.memref_slice %arg5[%14, %c0_i32_16] : memref<16x128xf32, #tpu.memory_space<vmem>> -> memref<1x128xf32, #tpu.memory_space<vmem>>
      %17 = tpu.memref_slice %arg6[%c0_i32_13] : memref<1x!tpu.dma_semaphore, #tpu.memory_space<semaphore_mem>> -> memref<1x!tpu.dma_semaphore, #tpu.memory_space<semaphore_mem>>
      %18 = tpu.memref_squeeze %17 : memref<1x!tpu.dma_semaphore, #tpu.memory_space<semaphore_mem>> -> memref<!tpu.dma_semaphore, #tpu.memory_space<semaphore_mem>>
      tpu.wait_dma2 semaphore(%18 : memref<!tpu.dma_semaphore, #tpu.memory_space<semaphore_mem>>) src(%15 : memref<1x128xf32, #tpu.memory_space<any>>) dst(%16 : memref<1x128xf32, #tpu.memory_space<vmem>>)
    }
    %c16_i32_5 = arith.constant 16 : i32
    %c0 = arith.constant 0 : index
    %3 = memref.load %arg2[%c0] : memref<1xf32, #tpu.memory_space<smem>>
    %c0_6 = arith.constant 0 : index
    %c0_7 = arith.constant 0 : index
    %4 = vector.load %arg5[%c0_6, %c0_7] : memref<16x128xf32, #tpu.memory_space<vmem>>, vector<16x128xf32>
    %5 = vector.broadcast %3 : f32 to vector<16x128xf32>
    %6 = arith.divf %4, %5 : vector<16x128xf32>
    %7 = math.roundeven %6 : vector<16x128xf32>
    %cst = arith.constant -1.000000e+00 : f32
    %cst_8 = arith.constant 1.000000e+00 : f32
    %8 = vector.broadcast %cst : f32 to vector<16x128xf32>
    %9 = arith.maximumf %8, %7 : vector<16x128xf32>
    %10 = vector.broadcast %cst_8 : f32 to vector<16x128xf32>
    %11 = arith.minimumf %10, %9 : vector<16x128xf32>
    %c0_9 = arith.constant 0 : index
    %c0_10 = arith.constant 0 : index
    %12 = vector.load %arg4[%c0_9, %c0_10] : memref<16x128xf32, #tpu.memory_space<vmem>>, vector<16x128xf32>
    tpu.vector_store %arg4[%c0_9, %c0_10], %11 {strides = array<i32>} : memref<16x128xf32, #tpu.memory_space<vmem>>, vector<16x128xf32>,
    return
  }
  func.func @transform_0(%arg0: i32, %arg1: memref<16xi32, #tpu.memory_space<smem>>) -> i32 {
    %c0_i32 = arith.constant 0 : i32
    %c0_i32_0 = arith.constant 0 : i32
    return %c0_i32 : i32
  }
  func.func @transform_2(%arg0: i32, %arg1: memref<16xi32, #tpu.memory_space<smem>>) -> (i32, i32) {
    %c0_i32 = arith.constant 0 : i32
    %c0_i32_0 = arith.constant 0 : i32
    return %arg0, %c0_i32 : i32, i32
  }
}

</mosaic_0001>

<bundles_post_ra>
// kernel: tpu_custom_call.1
= control target key start
LH: loop header
LB: loop body
LE: loop exit
PB: predicated region body
PF: predicated region fallthrough
CT: control target
= control target key end

     0   :  { %s270_s0 = inlined_call_operand.vmem [shape: s32[16], index: 0, kind: input, shape index: {}]   ;;  %s271_s1 = inlined_call_operand.<no memory space> [shape: f32[1], index: 1, kind: input, shape index: {}]   ;;  %s272_s2 = inlined_call_operand.hbm [shape: f32[512,128], index: 2, kind: input, shape index: {}]   ;;  %s273_s3 = inlined_call_operand.hbm [shape: f32[16,128], index: 3, kind: output, shape index: {}]  }
   0x1   :  { %s8_s14 = sshll.u32 %s270_s0, 4  ;;  %12 = sst [smem:[#allocation6]] %s271_s1  ;;  %s9_s14 = int_to_ptr.vmem [resolvable:$true] %s8_s14 }
   0x2   :  { %s128_s17 = scalar_lea.vmem %s9_s14, 16  ;;  %p133_p1 = scmp.lt.s32.totalorder %s9_s14, %s9_s14 }
   0x3   :  { %p129_p0 = scmp.ne.s32.totalorder %s9_s14, %s128_s17  ;;  %p134_p2 = scmp.lt.s32.totalorder %s128_s17, %s128_s17 }
   0x5   :  { %p135_p3 = por %p134_p2, %p133_p1 }
   0x7   :  { %p136_p4 = pnand %p135_p3, %p129_p0 }
   0x9   :  { %139 = shalt.err (!%p136_p4)  }
   0xa   :  { %s208_s18 = smov [#allocation5]  }
   0xb   :  { %11 = dma.vmem_to_smem %s9_s14, 16, %s208_s18, [#allocation4] }
   0xc   :  { %194 = dma.done.wait [#allocation4], 16 }
   0xd   :  { %195 = vsyncadd [#allocation4], 4294967280 }
   0xe   :  { %14 = sfence }
   0xf   :  { %15 = vsyncpa [#allocation8], 0  ;;  %s239_s19 = smov 0  }
  0x10 LB: > { %s26_s0 = sld [smem:[#allocation5 + %s202_s19]]  ;;  %s29_s1 = scalar_lea.vmem [#allocation2], %s202_s19  ;;  %s202_s19 = sphi %s239_s19, %s24_s19  }
  0x11   : > { %s37_s20 = sshll.u32 %s29_s1, 4  ;;  %s142_s28 = scalar_lea.hbm %s272_s2, 8192  ;;  %s38_s20 = int_to_ptr.vmem [resolvable:$true] %s37_s20 }
  0x16   : > { %s100_s21 = sshll.u32 %s26_s0, 4 }
  0x17   : > { %s28_s24 = scalar_lea.hbm %s272_s2, %s100_s21 }
  0x18   : > { %s140_s25 = scalar_lea.hbm %s28_s24, 16  ;;  %p143_p6 = scmp.lt.u32.totalorder %s28_s24, %s272_s2 }
  0x19   : > { %p141_p5 = scmp.ne.s32.totalorder %s28_s24, %s140_s25  ;;  %p144_p7 = scmp.lt.u32.totalorder %s142_s28, %s140_s25 }
  0x1a   : > { %p146_p9 = scmp.lt.u32.totalorder %s140_s25, %s28_s24 }
  0x1b   : > { %p145_p8 = por %p144_p7, %p143_p6 }
  0x1d   : > { %p147_p10 = por %p146_p9, %p145_p8 }
  0x1f   : > { %p148_p11 = pnand %p147_p10, %p141_p5 }
  0x21   : > { %151 = shalt.err (!%p148_p11)  }
  0x22   : > { %s152_s4 = scalar_lea.vmem %s38_s20, 16  ;;  %s209_s5 = smov [#allocation2]  }
  0x23   : > { %p153_p12 = scmp.ne.s32.totalorder %s38_s20, %s152_s4  ;;  %s154_s6 = sshll.u32 %s209_s5, 4  ;;  %s155_s6 = int_to_ptr.vmem [resolvable:$false] %s154_s6 }
  0x24   : > { %s156_s7 = scalar_lea.vmem %s155_s6, 256  ;;  %p157_p13 = scmp.lt.s32.totalorder %s38_s20, %s155_s6 }
  0x25   : > { %p158_p0 = scmp.lt.s32.totalorder %s156_s7, %s152_s4 }
  0x27   : > { %p159_p1 = por %p158_p0, %p157_p13 }
  0x29   : > { %p160_p2 = pnand %p159_p1, %p153_p12 }
  0x2b   : > { %163 = shalt.err (!%p160_p2)  }
  0x2c   : > { %40 = dma.hbm_to_vmem [thread:$0]  %s28_s24, 16, %s38_s20, [#allocation3] }
  0x2d   : > { %s24_s19 = sadd.s32 1, %s202_s19  }
  0x2e   : > { %p21_p3 = scmp.ge.s32.totalorder %s24_s19, 16  }
  0x2f   :  { %s204_s8 = smov (%p21_p3), 0  }
  0x30   :  { %23 = sbr.rel (!%p21_p3) target bundleno = 16 (0x10), region = 44 }
  0x37 LB: > { %196 = dma.done.wait [#allocation3], 16  ;;  %s206_s8 = sphi %s204_s8, %s46_s8  }
  0x38   : > { %197 = vsyncadd [#allocation3], 4294967280  ;;  %s46_s8 = sadd.s32 1, %s206_s8  }
  0x39   : > { %p43_p4 = scmp.ge.s32.totalorder %s46_s8, 16  }
  0x3a   :  { %s50_s9 = sld [smem:[#allocation6]] (%p43_p4)  ;;  %v51_v1 = vld [vmem:[#allocation2] sm:$0xff] (%p43_p4)  ;;  %v52_v2 = vld [vmem:[#allocation2 + $0x8] sm:$0xff] (%p43_p4)  ;;  %s210_s10 = smov (%p43_p4), [#allocation7]  }
  0x3b   :  { %45 = sbr.rel (!%p43_p4) target bundleno = 55 (0x37), region = 55  ;;  %s70_s11 = sshll.u32 (%p43_p4), %s210_s10, 4  ;;  %s71_s11 = int_to_ptr.vmem [resolvable:$true] %s70_s11 }
  0x3c   :  { %s164_s2 = scalar_lea.vmem (%p43_p4), %s71_s11, 256  ;;  %p169_p6 = scmp.lt.s32.totalorder (%p43_p4), %s71_s11, %s71_s11 }
  0x3d   :  { %p165_p5 = scmp.ne.s32.totalorder (%p43_p4), %s71_s11, %s164_s2  ;;  %p170_p7 = scmp.lt.s32.totalorder (%p43_p4), %s164_s2, %s164_s2 }
  0x3f   :  { %p171_p8 = por (%p43_p4), %p170_p7, %p169_p6 }
  0x40   :  { %v53_v0 = vstv (%p43_p4), %s50_s9 }
  0x41   :  { %126 = vrcp.f32 (%p43_p4), %v53_v0  ;;  %p172_p9 = pnand (%p43_p4), %p171_p8, %p165_p5 }
  0x4b   :  { %v127_v3 = vpop.eup %126 }
  0x4c   :  { %v55_v4 = vmul.f32 %v127_v3, %v51_v1  ;;  %v56_v5 = vmul.f32 %v127_v3, %v52_v2 }
  0x4e   :  { %v104_v6 = vround.rtne.f32 %v55_v4  ;;  %v105_v7 = vround.rtne.f32 %v56_v5 }
  0x50   :  { %v101_v8 = vclamps-f32 %v104_v6, 1.0  ;;  %v102_v9 = vclamps-f32 %v105_v7, 1.0 }
  0x52   :  { %63 = vst [vmem:[#allocation7] sm:$0xff] %v101_v8  ;;  %64 = vst [vmem:[#allocation7 + $0x8] sm:$0xff] %v102_v9 }
  0x53   :  { %175 = shalt.err (!%p172_p9)
}
  0x54   :  { %s176_s14 = scalar_lea.hbm %s273_s3, 256 }
  0x55   :  { %p177_p10 = scmp.ne.s32.totalorder %s273_s3, %s176_s14  ;;  %p180_p11 = scmp.lt.u32.totalorder %s176_s14, %s273_s3 }
  0x57   :  { %p182_p12 = pnand %p180_p11, %p177_p10 }
  0x59   :  { %185 = shalt.err (!%p182_p12)
}
  0x5a   :  { %s211_s19 = smov 128   ;;  %s212_s0 = smov 8  }
  0x5b   :  { %76 = dma.vmem_to_hbm [thread:$0]  %s71_s11, 256, %s273_s3, [#allocation8], %s211_s19, %s211_s19, %s212_s0  }
  0x5c   :  { %198 = dma.done.wait [#allocation8], 256  }
  0x5d   :  { %199 = vsyncadd [#allocation8], 4294967040 }
  0x5e   :  { %80 = vsyncpa [#allocation8], 1 }
  0x5f   :  { %81 = vsyncmov [#allocation3] }
  0x62   :  { %s82_s21 = vpop.sfrf %81 }
  0x63   :  { %p103_p13 = scmp.ne.s32.totalorder %s82_s21, 0 }
  0x65   :  { %86 = shalt.err (%p103_p13)  }

</bundles_post_ra>
